<compile_context>
chip_gen: v7x
topology: tpu7x:2x2x1
jax: 0.10.0
libtpu: 0.0.40
codegen_flags: <defaults>
</compile_context>

<pallas_src>
import functools

import numpy as np
import jax
import jax.numpy as jnp
from jax.experimental import pallas as pl
from jax.experimental.pallas import tpu as pltpu


# ----------------------------- Pallas kernels ------------------------------ #

def _concat_kernel_two_store(x_ref, v_ref, o_ref, *, n_left):
    """Seam is lane-aligned (n_left % 128 == 0): two unmasked stores."""
    o_ref[:, :n_left] = x_ref[...].astype(o_ref.dtype)
    o_ref[:, n_left:] = v_ref[...].astype(o_ref.dtype)


def _concat_kernel_single_store(x_ref, v_ref, o_ref):
    """Unaligned seam: materialize the tile once, one lane-dense store."""
    o_ref[...] = jnp.concatenate(
        [x_ref[...].astype(o_ref.dtype), v_ref[...].astype(o_ref.dtype)],
        axis=-1)


# ------------------------------- glue layer -------------------------------- #

def _round_up(v, m):
    return ((v + m - 1) // m) * m


def _vmem_capacity_bytes():
    """Per-TensorCore VMEM capacity; conservative default if query fails."""
    try:
        cap = int(pltpu.get_tpu_info().vmem_capacity_bytes)
        if cap > 0:
            return cap
    except Exception:
        pass
    return 64 << 20   # v7x-class lower bound; safe everywhere


def _choose_row_tile(n_rows, x_row_bytes, v_row_bytes, out_row_bytes,
                     vmem_capacity):
    """Row tile: multiple of 32 sublanes, sized from the real VMEM capacity."""
    if n_rows <= 32:
        return n_rows                       # whole array: block == full dims
    # Each of the 3 arrays is double-buffered by the BlockSpec pipeline.
    bytes_per_row = 2 * (x_row_bytes + v_row_bytes + out_row_bytes)
    if vmem_capacity <= (64 << 20):
        # v7x-class part: 64 MiB / TC, 2 TCs. Keep >=2 grid steps so both
        # TensorCores (and both DMA queues) share the copy.
        budget = 40 << 20
        tc_cap = _round_up(pl.cdiv(n_rows, 2), 32)
    else:
        # v5e / v6e: 128 MiB physical VMEM, single TensorCore.
        budget = 80 << 20
        tc_cap = _round_up(n_rows, 32)
    tr = budget // max(bytes_per_row, 1)
    tr = max(32, (tr // 32) * 32)
    tr = min(tr, tc_cap, _round_up(n_rows, 32))
    # TODO(synk): for extremely wide feature dims where even 32 rows exceed the
    # budget, a column-tiled grid would be needed; not required for this module.
    return min(tr, n_rows)


def concatenate_with_vector(x, additional_vector, *, row_tile=None,
                            force_pallas=False):
    """JAX/Pallas equivalent of `torch.cat((x, additional_vector.float()), dim=1)`."""
    v = additional_vector
    if x.ndim < 2 or v.ndim != x.ndim:
        raise ValueError("inputs must have the same rank >= 2")
    if x.shape[0] != v.shape[0] or x.shape[2:] != v.shape[2:]:
        raise ValueError("all dims except dim=1 must match")

    batch = x.shape[0]
    trailing = x.shape[2:]

    # Free, contiguous reshapes: dim=1 and trailing dims collapse into the lane
    # axis (row-major), so concat along dim=1 == concat along the last axis.
    x2d = x.reshape(batch, -1)
    v2d = v.reshape(batch, -1)
    n_left, n_right = x2d.shape[1], v2d.shape[1]
    n_out = n_left + n_right

    # `.to(torch.float)` on the vector, then torch.cat type promotion.
    out_dtype = jnp.promote_types(x.dtype, jnp.float32)
    out_itemsize = jnp.dtype(out_dtype).itemsize
    x_itemsize = jnp.dtype(x.dtype).itemsize
    v_itemsize = jnp.dtype(v.dtype).itemsize
    out_bytes = batch * n_out * out_itemsize

    # Small-input fallback: pallas_call fixed overhead dominates, and XLA fuses
    # the cast into its own concat anyway.
    tiny = (batch <= 8) or (out_bytes < (1 << 20))
    if tiny and not force_pallas and row_tile is None:
        out2d = jnp.concatenate(
            [x2d.astype(out_dtype), v2d.astype(out_dtype)], axis=-1)
        if trailing:
            return out2d.reshape((batch, x.shape[1] + v.shape[1]) + trailing)
        return out2d

    vmem_cap = _vmem_capacity_bytes()
    x_row_bytes = n_left * x_itemsize
    v_row_bytes = n_right * v_itemsize
    out_row_bytes = n_out * out_itemsize

    tr = row_tile if row_tile is not None else _choose_row_tile(
        batch, x_row_bytes, v_row_bytes, out_row_bytes, vmem_cap)
    tr = max(1, min(tr, batch))
    grid = (pl.cdiv(batch, tr),)

    # Make the chosen tiling legal for Mosaic's scoped-VMEM accounting.
    needed = 2 * tr * (x_row_bytes + v_row_bytes + out_row_bytes)
    vmem_limit = max(32 << 20, needed + (4 << 20))
    vmem_limit = min(vmem_limit, max(16 << 20, vmem_cap - (4 << 20)))

    if n_left % 128 == 0:
        kernel = functools.partial(_concat_kernel_two_store, n_left=n_left)
    else:
        kernel = _concat_kernel_single_store

    bytes_accessed = (batch * n_left * x_itemsize
                      + batch * n_right * v_itemsize
                      + out_bytes)

    out2d = pl.pallas_call(
        kernel,
        out_shape=jax.ShapeDtypeStruct((batch, n_out), out_dtype),
        grid=grid,
        in_specs=[
            pl.BlockSpec((tr, n_left), lambda i: (i, 0)),
            pl.BlockSpec((tr, n_right), lambda i: (i, 0)),
        ],
        out_specs=pl.BlockSpec((tr, n_out), lambda i: (i, 0)),
        compiler_params=pltpu.CompilerParams(
            dimension_semantics=("parallel",),
            vmem_limit_bytes=int(vmem_limit)),
        cost_estimate=pl.CostEstimate(
            flops=0, transcendentals=0, bytes_accessed=int(bytes_accessed)),
    )(x2d, v2d)

    if trailing:
        return out2d.reshape((batch, x.shape[1] + v.shape[1]) + trailing)
    return out2d


class ConcatenateWithVector:
    """JAX/Pallas port of the PyTorch `ConcatenateWithVector` module."""

    def __init__(self):
        pass

    def __call__(self, x, additional_vector):
        return concatenate_with_vector(x, additional_vector)


# ---------------------------------- main ----------------------------------- #

if __name__ == "__main__":
    key = jax.random.PRNGKey(0)
    k1, k2, k3, k4, k5, k6, k7, k8 = jax.random.split(key, 8)

    module = ConcatenateWithVector()

    # Case 1: tiny flattened features + int clinical vars -> fallback path.
    x1 = jax.random.normal(k1, (2, 32), dtype=jnp.float32)
    v1 = jax.random.randint(k2, (2, 8), minval=0, maxval=10, dtype=jnp.int32)
    y1 = jax.block_until_ready(module(x1, v1))
    ref1 = jnp.concatenate([x1, v1.astype(jnp.float32)], axis=1)
    assert y1.dtype == jnp.float32
    np.testing.assert_allclose(np.asarray(y1), np.asarray(ref1), rtol=0, atol=0)

    # Case 2: Pallas kernel, multi-step row-tiled grid, lane-aligned seam,
    # fused bf16 -> f32 cast of the clinical-variable slab.
    x2 = jax.random.normal(k3, (16, 256), dtype=jnp.float32)
    v2 = jax.random.normal(k4, (16, 8), dtype=jnp.bfloat16)
    y2 = jax.block_until_ready(
        concatenate_with_vector(x2, v2, row_tile=8, force_pallas=True))
    ref2 = jnp.concatenate([x2, v2.astype(jnp.float32)], axis=1)
    np.testing.assert_allclose(np.asarray(y2), np.asarray(ref2), rtol=0, atol=0)

    # Case 3: NCHW feature maps concatenated along the channel dim (Pallas).
    x3 = jax.random.normal(k5, (2, 4, 16, 16), dtype=jnp.float32)
    v3 = jax.random.normal(k6, (2, 2, 16, 16), dtype=jnp.float32)
    y3 = jax.block_until_ready(
        concatenate_with_vector(x3, v3, force_pallas=True))
    ref3 = jnp.concatenate([x3, v3], axis=1)
    assert y3.shape == (2, 6, 16, 16)
    np.testing.assert_allclose(np.asarray(y3), np.asarray(ref3), rtol=0, atol=0)

    # Case 4: unaligned seam (n_left % 128 != 0) -> single full-width store path.
    x4 = jax.random.normal(k7, (32, 200), dtype=jnp.float32)
    v4 = jax.random.normal(k8, (32, 24), dtype=jnp.float32)
    y4 = jax.block_until_ready(
        concatenate_with_vector(x4, v4, force_pallas=True))
    ref4 = jnp.concatenate([x4, v4], axis=1)
    np.testing.assert_allclose(np.asarray(y4), np.asarray(ref4), rtol=0, atol=0)

    print("KERNEL_OK")
</pallas_src>

<mosaic_0001>
module attributes {stable_mosaic.version = 11 : i64} {
  func.func @_concat_kernel_two_store(%arg0: i32, %arg1: memref<8x256xf32, #tpu.memory_space<vmem>>, %arg2: memref<8x8xbf16, #tpu.memory_space<vmem>>, %arg3: memref<8x264xf32, #tpu.memory_space<vmem>>) attributes {dimension_semantics = [#tpu.dimension_semantics<parallel>], iteration_bounds = array<i64: 2>, scalar_prefetch = 0 : i64, scratch_operands = 0 : i64, tpu.core_type = #tpu.core_type<tc>, window_params = [{transform_indices = @transform_0, window_bounds = array<i64: 8, 256>}, {transform_indices = @transform_1, window_bounds = array<i64: 8, 8>}, {transform_indices = @transform_2, window_bounds = array<i64: 8, 264>}]} {
    %c0 = arith.constant 0 : index
    %c0_0 = arith.constant 0 : index
    %0 = vector.load %arg1[%c0, %c0_0] : memref<8x256xf32, #tpu.memory_space<vmem>>, vector<8x256xf32>
    %c0_1 = arith.constant 0 : index
    %c0_2 = arith.constant 0 : index
    %1 = vector.load %arg3[%c0_1, %c0_2] : memref<8x264xf32, #tpu.memory_space<vmem>>, vector<8x256xf32>
    tpu.vector_store %arg3[%c0_1, %c0_2], %0 {strides = array<i32>} : memref<8x264xf32, #tpu.memory_space<vmem>>, vector<8x256xf32>,
    %c0_3 = arith.constant 0 : index
    %c0_4 = arith.constant 0 : index
    %2 = vector.load %arg2[%c0_3, %c0_4] : memref<8x8xbf16, #tpu.memory_space<vmem>>, vector<8x8xbf16>
    %3 = arith.extf %2 : vector<8x8xbf16> to vector<8x8xf32>
    %c0_5 = arith.constant 0 : index
    %c256 = arith.constant 256 : index
    %4 = vector.load %arg3[%c0_5, %c256] : memref<8x264xf32, #tpu.memory_space<vmem>>, vector<8x8xf32>
    tpu.vector_store %arg3[%c0_5, %c256], %3 {strides = array<i32>} : memref<8x264xf32, #tpu.memory_space<vmem>>, vector<8x8xf32>,
    return
  }
  func.func @transform_0(%arg0: i32) -> (i32, i32) {
    %c0_i32 = arith.constant 0 : i32
    %c0_i32_0 = arith.constant 0 : i32
    return %arg0, %c0_i32 : i32, i32
  }
  func.func @transform_1(%arg0: i32) -> (i32, i32) {
    %c0_i32 = arith.constant 0 : i32
    %c0_i32_0 = arith.constant 0 : i32
    return %arg0, %c0_i32 : i32, i32
  }
  func.func @transform_2(%arg0: i32) -> (i32, i32) {
    %c0_i32 = arith.constant 0 : i32
    %c0_i32_0 = arith.constant 0 : i32
    return %arg0, %c0_i32 : i32, i32
  }
}

</mosaic_0001>

<bundles_post_ra>
// kernel: tpu_custom_call.1
= control target key start
LH: loop header
LB: loop body
LE: loop exit
PB: predicated region body
PF: predicated region fallthrough
CT: control target
= control target key end

     0   :  { %7 = vsyncpa [#allocation3], 0  ;;  %s625_s0 = inlined_call_operand.hbm [shape: f32[16,256], index: 0, kind: input, shape index: {}]   ;;  %s626_s1 = inlined_call_operand.vmem [shape: bf16[16,8], index: 1, kind: input, shape index: {}]   ;;  %s627_s2 = inlined_call_operand.hbm [shape: f32[16,264], index: 2, kind: output, shape index: {}]  }
   0x1   :  { %9 = vsyncpa [#allocation3 + $0x1], 0 }
   0x2   :  { %10 = vsyncpa [#allocation4], 0 }
   0x3   :  { %12 = vsyncpa [#allocation4 + $0x1], 0  ;;  %s458_s9 = smov 0   ;;  %s460_s10 = smov 0  }
   0x4   :  { %s462_s11 = smov 0   ;;  %s464_s12 = smov 0  }
   0x5 LB: > { %s479_s13 = sadd.s32 4294967295, %s439_s12   ;;  %s282_s14 = sadd.s32 4294967294, %s439_s12   ;;  %s439_s12 = sphi %s464_s12, %s642_s12   ;;  %s435_s11 = sphi %s462_s11, %s641_s11   ;;  %s431_s10 = sphi %s460_s10, %s640_s10   ;;  %s427_s9 = sphi %s458_s9, %s639_s9  }
   0x6   : > { %s483_s15 = sadd.s32 1, %s439_s12   ;;  %s25_s16 = sadd.s32 1, %s435_s11 }
   0x7   : > { %s22_s17 = ssub.s32 %s439_s12, %s483_s15  ;;  %p32_p0 = scmp.ne.s32.totalorder %s435_s11, %s431_s10 }
   0x8   : > { %p23_p1 = scmp.eq.s32.totalorder %s22_s17, 0  ;;  %p33_p2 = scmp.eq.s32.totalorder %s439_s12, 0 }
   0x9   : > { %p38_p3 = scmp.ne.s32.totalorder %s431_s10, %s427_s9  ;;  %p39_p4 = scmp.eq.s32.totalorder %s479_s13, 0 }
   0xa   : > { %s495_s18 = scalar_select %p23_p1, %s435_s11, %s25_s16  }
   0xb   : > { %p497_p5 = por %p33_p2, %p32_p0  ;;  %p501_p6 = por %p39_p4, %p38_p3 }
   0xc   : > { %p88_p7 = scmp.eq.s32.totalorder %s479_s13, 1  ;;  %p94_p8 = scmp.eq.s32.totalorder %s282_s14, 1 }
   0xd   : > { %p309_p10 = scmp.lt.s32.totalorder %s439_s12, 2  ;;  %s114_s23 = sand.u32 1, %s435_s11  }
   0xe   : > { %p508_p11 = por %p88_p7, %p32_p0  ;;  %p512_p12 = por %p94_p8, %p38_p3 }
   0xf   : > { %s294_s24 = sshll.u32 %s439_s12, 8  ;;  %s285_s25 = sshll.u32 %s114_s23, 4 }
  0x10   : > { %s631_s21 = scalar_select %p508_p11, 1, 0 }
  0x11   : > { %s632_s22 = scalar_select %p512_p12, 1, 0 }
  0x12   : > { %s521_s28 = scalar_lea.hbm %s625_s0, %s294_s24  ;;  %s118_s29 = scalar_lea.vmem [#allocation2], %s285_s25 }
  0x13   : > { %s126_s30 = sshll.u32 %s118_s29, 4  ;;  %p525_p13 = pnand %p309_p10, %p497_p5  ;;  %s529_s30 = int_to_ptr.vmem [resolvable:$true] %s126_s30 }
  0x14   : > { %s115_s4 = scalar_lea.sflag [#allocation3], %s114_s23  ;;  %s343_s5 = scalar_lea.hbm %s521_s28, 256 }
  0x15   : > { %p344_p2 = scmp.ne.s32.totalorder %s521_s28, %s343_s5  ;;  %p345_p3 = pneg %p525_p13 }
  0x16   : > { %s348_s8 = scalar_lea.hbm %s625_s0, 512  ;;  %p349_p5 = scmp.lt.u32.totalorder %s521_s28, %s625_s0 }
  0x17   : > { %p346_p4 = pnand %p345_p3, %p344_p2  ;;  %p350_p8 = scmp.lt.u32.totalorder %s348_s8, %s343_s5 }
  0x18   : > { %p352_p9 = scmp.lt.u32.totalorder %s343_s5, %s521_s28 }
  0x19   : > { %p347_p7 = pneg %p346_p4  ;;  %p351_p10 = por %p350_p8, %p349_p5 }
  0x1b   : > { %p353_p0 = por %p352_p9, %p351_p10 }
  0x1d   : > { %p354_p1 = pnand %p353_p0, %p347_p7 }
  0x1f   : > { %357 = shalt.err (!%p354_p1)
}
  0x20   : > { %s358_s17 = scalar_lea.vmem %s529_s30, 256  ;;  %s441_s19 = smov [#allocation2]  }
  0x21   : > { %p359_p2 = scmp.ne.s32.totalorder %s529_s30, %s358_s17  ;;  %s363_s23 = sshll.u32 %s441_s19, 4  ;;  %s364_s23 = int_to_ptr.vmem [resolvable:$false] %s363_s23 }
  0x22   : > { %s365_s24 = scalar_lea.vmem %s364_s23, 512  ;;  %p366_p11 = scmp.lt.s32.totalorder %s529_s30, %s364_s23 }
  0x23   : > { %p361_p4 = pnand %p359_p2, %p345_p3  ;;  %p367_p5 = scmp.lt.s32.totalorder %s365_s24, %s358_s17 }
  0x25   : > { %p362_p12 = pneg %p361_p4  ;;  %p368_p8 = por %p367_p5, %p366_p11 }
  0x27   : > { %p369_p9 = pnand %p368_p8, %p362_p12 }
  0x29   : > { %372 = shalt.err (!%p369_p9)
}
  0x2a   : > { %304 = dma.hbm_to_vmem [thread:$0]  (!%p525_p13), %s521_s28, 256, %s529_s30, %s115_s4  }
  0x2b   : > { %p634_p0 = scmp.lt.s32.totalorder %s439_s12, 3  ;;  %p635_p1 = scmp.ge.s32.totalorder %s439_s12, 1 }
  0x2d   : > { %p139_p3 = pnand %p635_p1, %p634_p0 }
  0x2e   : > { %s563_s25 = sand.u32 (!%p139_p3), 1, %s431_s10  }
  0x2f   : > { %142 = sbr.rel (%p139_p3) target bundleno = 84 (0x54), region = 28  ;;  %s289_s26 = sshll.u32 (!%p139_p3), %s563_s25, 4 }
  0x30   : > { %s145_s27 = scalar_lea.sflag (!%p139_p3), [#allocation3], %s563_s25  ;;  %s148_s29 = scalar_lea.vmem (!%p139_p3), [#allocation2], %s289_s26 }
  0x36   : > { %418 = dma.done.wait (%p501_p6), %s145_s27, 256  }
  0x37   : > { %420 = vsyncadd (%p501_p6), %s145_s27, 4294967040  ;;  %s295_s28 = smul.u32 24, %s563_s25  ;;  %p173_p11 = scmp.lt.s32.totalorder %s479_s13, 1  ;;  %v177_v0 = vld [vmem:[%s148_s29] sm:$0xff]  ;;  %v178_v1 = vld [vmem:[%s148_s29 + $0x8] sm:$0xff]  ;;  %vm183_vm0 = vcmask 64512  }
  0x38   : > { %s296_s3 = smul.u32 384, %s479_s13  ;;  %s186_s17 = scalar_lea.sflag [#allocation4], %s563_s25 }
  0x39   : > { %s174_s30 = scalar_select %p173_p11, %s479_s13, 1 }
  0x3a   : > { %s172_s4 = scalar_lea.vmem [#allocation5], %s295_s28  ;;  %s583_s16 = scalar_lea.hbm %s627_s2, %s296_s3 }
  0x3b   : > { %s200_s5 = sshll.u32 %s172_s4, 4  ;;  %s290_s6 = sshll.u32 %s174_s30, 2  ;;  %179 = vst [vmem:[%s172_s4] sm:$0xff] %v177_v0  ;;  %180 = vst [vmem:[%s172_s4 + $0x8] sm:$0xff] %v178_v1  ;;  %s578_s5 = int_to_ptr.vmem [resolvable:$true] %s200_s5 }
  0x3c   : > { %s176_s8 = scalar_lea.vmem %s626_s1, %s290_s6  ;;  %s373_s19 = scalar_lea.vmem %s578_s5, 384 }
  0x3d   : > { %v181_v2 = vld [vmem:[%s176_s8] sm:$0xf]  ;;  %p374_p6 = scmp.ne.s32.totalorder %s578_s5, %s373_s19  ;;  %p636_p12 = scmp.ne.s32.totalorder %s631_s21, 0 }
  0x3e   : > { %v182_v3 = vunpack.c.l.bf16 %v181_v2  ;;  %s442_s23 = smov [#allocation5]  }
  0x3f   : > { %p375_p13 = pnand %p374_p6, %p636_p12  ;;  %s377_s24 = sshll.u32 %s442_s23, 4  ;;  %s378_s24 = int_to_ptr.vmem [resolvable:$false] %s377_s24 }
  0x40   : > { %184 = vst.msk [vmem:[%s172_s4 + $0x10] sm:$0xff] %vm183_vm0, %v182_v3  ;;  %s379_s26 = scalar_lea.vmem %s378_s24, 768  ;;  %p380_p10 = scmp.lt.s32.totalorder %s578_s5, %s378_s24 }
  0x41   : > { %p376_p7 = pneg %p375_p13  ;;  %p381_p2 = scmp.lt.s32.totalorder %s379_s26, %s373_s19 }
  0x43   : > { %p382_p4 = por %p381_p2, %p380_p10 }
  0x45   : > { %p383_p5 = pnand %p382_p4, %p376_p7 }
  0x47   : > { %386 = shalt.err (!%p383_p5)
}
  0x48   : > { %s387_s25 = scalar_lea.hbm %s583_s16, 384  ;;  %s391_s28 = scalar_lea.hbm %s627_s2, 768 }
  0x49   : > { %p388_p8 = scmp.ne.s32.totalorder %s583_s16, %s387_s25  ;;  %p392_p1 = scmp.lt.u32.totalorder %s583_s16, %s627_s2 }
  0x4a   : > { %p393_p3 = scmp.lt.u32.totalorder %s391_s28, %s387_s25  ;;  %p395_p6 = scmp.lt.u32.totalorder %s387_s25, %s583_s16 }
  0x4b   : > { %p389_p9 = pnand %p388_p8, %p636_p12 }
  0x4c   : > { %p394_p11 = por %p393_p3, %p392_p1 }
  0x4d   : > { %p390_p0 = pneg %p389_p9 }
  0x4e   : > { %p396_p13 = por %p395_p6, %p394_p11 }
  0x50   : > { %p397_p7 = pnand %p396_p13, %p390_p0 }
  0x52   : > { %400 = shalt.err (!%p397_p7)
}
  0x53   : > { %299 = dma.vmem_to_hbm [thread:$0]  (%p636_p12), %s578_s5, 384, %s583_s16, %s186_s17  }
  0x54 PF: > { %s212_s4 = sand.u32 1, %s427_s9   ;;  %p637_p10 = scmp.ne.s32.totalorder %s632_s22, 0 }
  0x55   : > { %p638_p2 = scmp.ge.s32.totalorder %s439_s12, 2  ;;  %s213_s6 = scalar_lea.sflag [#allocation4], %s212_s4 }
  0x57   : > { %p306_p4 = pnand %p638_p2, %p637_p10 }
  0x59   : > { %422 = dma.done.wait (!%p306_p4), %s213_s6, 384  }
  0x5a   : > { %424 = vsyncadd (!%p306_p4), %s213_s6, 4294966912  ;;  %p15_p5 = scmp.ge.s32.totalorder %s483_s15, 4   ;;  %s639_s9 = smov %s431_s10 }
  0x5b   : > { %s640_s10 = smov %s435_s11  ;;  %s641_s11 = smov %s495_s18 }
  0x5c   : > { %s642_s12 = smov %s483_s15  ;;  %17 = sbr.rel (!%p15_p5) target bundleno = 5 (0x5), region = 76 }
  0x63   :  { %218 = vsyncpa [#allocation3], 1 }
  0x64   :  { %220 = vsyncpa [#allocation3 + $0x1], 1 }
  0x65   :  { %221 = vsyncpa [#allocation4], 1 }
  0x66   :  { %223 = vsyncpa [#allocation4 + $0x1], 1 }

</bundles_post_ra>
